<compile_context>
chip_gen: v7x
topology: tpu7x:2x2x1
jax: 0.10.0
libtpu: 0.0.40
codegen_flags: <defaults>
</compile_context>

<pallas_src>
import functools

import jax
import jax.numpy as jnp
from jax.experimental import pallas as pl
from jax.experimental.pallas import tpu as pltpu


# ------------------------------ small helpers -------------------------------

_SUBLANE = {1: 32, 2: 16, 4: 8, 8: 8}  # dtype-native sublane packing


def _round_up(n, m):
    return ((n + m - 1) // m) * m


def _cdiv(a, b):
    return -(-a // b)


def _tpu_budgets():
    """(input_double_buffer_budget_bytes, vmem_limit_bytes), generation-aware."""
    try:
        cap = int(getattr(pltpu.get_tpu_info(), "vmem_capacity_bytes",
                          64 * 1024 * 1024))
    except Exception:
        cap = 64 * 1024 * 1024
    if cap >= 100 * 1024 * 1024:            # v5e / v6e: 128 MiB physical VMEM
        return 24 * 1024 * 1024, 64 * 1024 * 1024
    # v7x (64 MiB per TC) or unknown: leave headroom for compiler scratch
    return 12 * 1024 * 1024, 40 * 1024 * 1024


# ------------------------------ Pallas kernels ------------------------------

def _sq_l2_rows_kernel(x_ref, y_ref, o_ref, *, n_rows, n_cols):
    """o[b, 0] = sum_d (x[b,d] - y[b,d])^2, accumulated over the D grid axis.

    Tail rows/lanes (grid does not need to divide B or D) are masked in-kernel;
    the masking code is only emitted when a tail actually exists.
    """
    i = pl.program_id(0)
    k = pl.program_id(1)
    bm, td = x_ref.shape

    @pl.when(k == 0)
    def _():
        o_ref[...] = jnp.zeros_like(o_ref)

    d = x_ref[...].astype(jnp.float32) - y_ref[...].astype(jnp.float32)

    mask = None
    if n_rows % bm != 0:
        rows = jax.lax.broadcasted_iota(jnp.int32, (bm, td), 0) + i * bm
        mask = rows < n_rows
    if n_cols % td != 0:
        cols = jax.lax.broadcasted_iota(jnp.int32, (bm, td), 1) + k * td
        cmask = cols < n_cols
        mask = cmask if mask is None else (mask & cmask)
    if mask is not None:
        d = jnp.where(mask, d, 0.0)

    # TODO(synk): for multi-step D tiling, accumulate into a (bm, td) f32
    # scratch and reduce across lanes once on the last k step (kernel is
    # HBM-bound, so the per-step XLU reduce is typically hidden anyway).
    o_ref[...] += jnp.sum(d * d, axis=-1, keepdims=True)


def _sq_l2_total_kernel(x_ref, y_ref, o_ref, *, n_rows):
    """Scalar sum_of((x - y)^2) over a lane-dense (R, W) slab."""
    i = pl.program_id(0)
    bm = x_ref.shape[0]

    @pl.when(i == 0)
    def _():
        o_ref[...] = jnp.zeros_like(o_ref)

    d = x_ref[...].astype(jnp.float32) - y_ref[...].astype(jnp.float32)
    if n_rows % bm != 0:
        rows = jax.lax.broadcasted_iota(jnp.int32, d.shape, 0) + i * bm
        d = jnp.where(rows < n_rows, d, 0.0)
    o_ref[...] += jnp.sum(d * d)


# ------------------------------ kernel wrappers ------------------------------

def _sq_l2_rows(x, y, d_tile=None):
    """Per-row squared-L2 distance of two (B, D) arrays -> (B,) float32."""
    assert x.ndim == 2 and x.shape == y.shape, (x.shape, y.shape)
    B, D = x.shape
    itemsize = max(jnp.dtype(x.dtype).itemsize, jnp.dtype(y.dtype).itemsize)
    sublane = _SUBLANE.get(itemsize, 8)
    input_budget, vmem_limit = _tpu_budgets()

    # --- lane (feature) tile: single block for moderate D; lane-aligned tiles
    #     (reduction grid axis, last) only for very large D. ---
    if d_tile is not None and int(d_tile) < D:
        TD = int(d_tile)
        assert TD % 128 == 0, "d_tile must be a multiple of 128 (or >= D)"
    elif D > 8192:
        TD = 1024
    else:
        TD = D

    # --- row (sublane) tile sized by bytes-per-grid-step:
    #     2 inputs x 2 pipeline buffers x BM x TD x itemsize <= input_budget,
    #     rounded to the dtype-native sublane multiple, never exceeding B, and
    #     capped at ~B/2 so the parallel row axis spans both v7x TensorCores.
    if B < sublane:
        BM = B                                   # block == full dim (allowed)
    else:
        bm = input_budget // (4 * TD * itemsize)
        bm = (bm // sublane) * sublane
        half = _round_up(_cdiv(B, 2), sublane)
        bm = min(bm, half, (B // sublane) * sublane)
        BM = max(sublane, bm)

    grid = (_cdiv(B, BM), _cdiv(D, TD))          # rows parallel, reduction last

    out = pl.pallas_call(
        functools.partial(_sq_l2_rows_kernel, n_rows=B, n_cols=D),
        out_shape=jax.ShapeDtypeStruct((B, 1), jnp.float32),
        grid=grid,
        in_specs=[
            pl.BlockSpec((BM, TD), lambda i, k: (i, k)),
            pl.BlockSpec((BM, TD), lambda i, k: (i, k)),
        ],
        out_specs=pl.BlockSpec((BM, 1), lambda i, k: (i, 0)),
        compiler_params=pltpu.CompilerParams(
            dimension_semantics=("parallel", "arbitrary"),
            vmem_limit_bytes=vmem_limit,
        ),
        cost_estimate=pl.CostEstimate(
            flops=3 * B * D,
            transcendentals=0,
            bytes_accessed=2 * B * D * itemsize + 4 * B,
        ),
    )(x, y)
    return out[:, 0]                             # (B,) float32


def _sq_l2_all_flat(x, y):
    """dim=None fast path: flatten to a lane-dense (R, W) slab (free reshape)
    and run a single full-reduction kernel. Returns None if no lane-aligned
    factorization exists (caller falls back to the per-row kernel)."""
    xf = x.reshape(-1)
    yf = y.reshape(-1)
    N = xf.size
    W = None
    for cand in (2048, 1024, 512, 256, 128):
        if N % cand == 0:
            W = cand
            break
    if W is None:
        return None
    R = N // W

    itemsize = max(jnp.dtype(x.dtype).itemsize, jnp.dtype(y.dtype).itemsize)
    sublane = _SUBLANE.get(itemsize, 8)
    input_budget, vmem_limit = _tpu_budgets()

    if R < sublane:
        BM = R
    else:
        bm = input_budget // (4 * W * itemsize)
        bm = (bm // sublane) * sublane
        BM = max(sublane, min(bm, (R // sublane) * sublane))

    out = pl.pallas_call(
        functools.partial(_sq_l2_total_kernel, n_rows=R),
        out_shape=jax.ShapeDtypeStruct((1, 1), jnp.float32),
        grid=(_cdiv(R, BM),),
        in_specs=[
            pl.BlockSpec((BM, W), lambda i: (i, 0)),
            pl.BlockSpec((BM, W), lambda i: (i, 0)),
        ],
        out_specs=pl.BlockSpec((1, 1), lambda i: (0, 0)),
        compiler_params=pltpu.CompilerParams(
            dimension_semantics=("arbitrary",),
            vmem_limit_bytes=vmem_limit,
        ),
        cost_estimate=pl.CostEstimate(
            flops=3 * N,
            transcendentals=0,
            bytes_accessed=2 * N * itemsize + 4,
        ),
    )(xf.reshape(R, W), yf.reshape(R, W))
    return out[0, 0]


def _squared_l2(x, y, dim=None, d_tile=None):
    """Squared-L2 metric; dim=None -> scalar, dim=-1/last -> reduce last axis."""
    x = jnp.asarray(x)                  # no wrapper upcast; kernel casts to f32
    y = jnp.asarray(y)
    assert x.shape == y.shape, (x.shape, y.shape)
    if dim is None:
        fast = _sq_l2_all_flat(x, y)
        if fast is not None:
            return fast
        x2 = x.reshape(-1, x.shape[-1]) if x.ndim > 1 else x.reshape(1, -1)
        y2 = y.reshape(-1, y.shape[-1]) if y.ndim > 1 else y.reshape(1, -1)
        return jnp.sum(_sq_l2_rows(x2, y2, d_tile=d_tile))
    if dim in (-1, x.ndim - 1):
        lead = x.shape[:-1]
        x2 = x.reshape(-1, x.shape[-1])
        y2 = y.reshape(-1, y.shape[-1])
        return _sq_l2_rows(x2, y2, d_tile=d_tile).reshape(lead)
    raise NotImplementedError("only dim=None or last-dim reduction supported")


# --------------------------- Metric class hierarchy --------------------------

def _evaluate_fused(metric, x, y, dim):
    """Flatten the ScaleMetric/SumMetric tree into weighted leaf terms, merge
    identical leaves, and launch each distinct leaf kernel exactly once."""
    merged = {}
    order = []
    for w, leaf in metric._terms():
        key = leaf._fusion_key()
        if key not in merged:
            merged[key] = [0.0, leaf]
            order.append(key)
        merged[key][0] = merged[key][0] + w
    result = None
    for key in order:
        w, leaf = merged[key]
        val = leaf._evaluate(x, y, dim)
        # Skip the scale only for a *Python* 1.0; traced factors are applied
        # unconditionally (cheap op on the tiny output).
        is_unit = isinstance(w, (int, float)) and not isinstance(w, bool) and w == 1.0
        if not is_unit:
            val = w * val
        result = val if result is None else result + val
    return result


class Metric:
    """Abstract metric; composition mirrors the PyTorch module."""

    def __call__(self, x, y, dim=None):
        return self.forward(x, y, dim=dim)

    def forward(self, x, y, dim=None):
        return _evaluate_fused(self, x, y, dim)

    # -- composition / fusion plumbing --
    def _terms(self):
        return [(1.0, self)]

    def _fusion_key(self):
        return id(self)

    def _evaluate(self, x, y, dim):
        raise NotImplementedError

    def __add__(self, other):
        return SumMetric(self, other)

    def __rmul__(self, scalar):
        # NOTE: the original PyTorch code calls ScaleMetric(scalar, self),
        # swapping the constructor args; we preserve the intended semantics
        # factor * metric.
        return ScaleMetric(self, scalar)


class ScaleMetric(Metric):
    def __init__(self, metric1, factor):
        self.metric1 = metric1
        self.factor = factor

    def _terms(self):
        return [(self.factor * w, m) for (w, m) in self.metric1._terms()]


class SumMetric(Metric):
    def __init__(self, metric1, metric2):
        self.metric1 = metric1
        self.metric2 = metric2

    def _terms(self):
        return self.metric1._terms() + self.metric2._terms()


class SquaredL2Metric(Metric):
    """Concrete base metric (the abstract Metric.forward is `pass`).
    # TODO(synk): the paper uses PCAMetric; its learned covariance is not
    # specified here, so squared-L2 is the concrete Pallas-backed base metric.
    """

    def _fusion_key(self):
        return SquaredL2Metric          # stateless -> merge across instances

    def _evaluate(self, x, y, dim):
        return _squared_l2(x, y, dim=dim)


# ----------------------------------- main ------------------------------------

if __name__ == "__main__":
    key = jax.random.PRNGKey(0)
    kx, ky, kx2, ky2, kx3, ky3 = jax.random.split(key, 6)

    # Small shapes; B=12 deliberately not a multiple of 8 to exercise the
    # in-kernel tail masking (no wrapper-side padding anymore).
    B, D = 12, 32
    x = jax.random.normal(kx, (B, D), dtype=jnp.float32)
    y = jax.random.normal(ky, (B, D), dtype=jnp.float32)

    base = SquaredL2Metric()
    # Composition exercising __rmul__ (ScaleMetric) and __add__ (SumMetric);
    # fuses to a single pallas_call with total weight 3.5.
    metric = 2.5 * base + base

    out_lastdim = metric(x, y, dim=-1)       # (B,)   row kernel, 2 row blocks
    out_all = metric(x, y, dim=None)         # ()     lane-dense full reduction
    jax.block_until_ready(out_lastdim)
    jax.block_until_ready(out_all)

    ref_lastdim = 3.5 * jnp.sum((x - y) ** 2, axis=-1)
    ref_all = 3.5 * jnp.sum((x - y) ** 2)
    assert out_lastdim.shape == (B,)
    assert out_all.shape == ()
    assert jnp.allclose(out_lastdim, ref_lastdim, rtol=1e-5, atol=1e-5)
    assert jnp.allclose(out_all, ref_all, rtol=1e-5, atol=1e-5)

    # bf16 inputs (16-sublane tiles, no wrapper upcast) with a D-tiled
    # reduction grid and a lane tail (D=320, TD=128 -> masked last lane block).
    xb = jax.random.normal(kx2, (16, 320), dtype=jnp.bfloat16)
    yb = jax.random.normal(ky2, (16, 320), dtype=jnp.bfloat16)
    out_bf16 = _sq_l2_rows(xb, yb, d_tile=128)
    jax.block_until_ready(out_bf16)
    ref_bf16 = jnp.sum(
        (xb.astype(jnp.float32) - yb.astype(jnp.float32)) ** 2, axis=-1)
    assert out_bf16.shape == (16,)
    assert jnp.allclose(out_bf16, ref_bf16, rtol=1e-3, atol=1e-3)

    # dim=None fallback path (flat size not a multiple of 128) with B < 8 and
    # D < 128 (block == full array dims).
    xs = jax.random.normal(kx3, (5, 20), dtype=jnp.float32)
    ys = jax.random.normal(ky3, (5, 20), dtype=jnp.float32)
    out_small = base(xs, ys, dim=None)
    jax.block_until_ready(out_small)
    assert jnp.allclose(out_small, jnp.sum((xs - ys) ** 2), rtol=1e-5, atol=1e-5)

    print("KERNEL_OK")
</pallas_src>

<mosaic_0001>
module attributes {stable_mosaic.version = 11 : i64} {
  func.func @_sq_l2_rows_kernel(%arg0: i32, %arg1: i32, %arg2: memref<8x32xf32, #tpu.memory_space<vmem>>, %arg3: memref<8x32xf32, #tpu.memory_space<vmem>>, %arg4: memref<8x1xf32, #tpu.memory_space<vmem>>) attributes {dimension_semantics = [#tpu.dimension_semantics<parallel>, #tpu.dimension_semantics<arbitrary>], iteration_bounds = array<i64: 2, 1>, scalar_prefetch = 0 : i64, scratch_operands = 0 : i64, tpu.core_type = #tpu.core_type<tc>, window_params = [{transform_indices = @transform_0, window_bounds = array<i64: 8, 32>}, {transform_indices = @transform_1, window_bounds = array<i64: 8, 32>}, {transform_indices = @transform_2, window_bounds = array<i64: 8, 1>}]} {
    %c0_i32 = arith.constant 0 : i32
    %0 = arith.cmpi eq, %arg1, %c0_i32 : i32
    %1 = arith.extui %0 : i1 to i32
    %c0_i32_0 = arith.constant 0 : i32
    %2 = arith.cmpi ne, %1, %c0_i32_0 : i32
    scf.if %2 {
      %cst_9 = arith.constant 0.000000e+00 : f32
      %20 = vector.broadcast %cst_9 : f32 to vector<8x1xf32>
      %c0_10 = arith.constant 0 : index
      %c0_11 = arith.constant 0 : index
      %21 = vector.load %arg4[%c0_10, %c0_11] : memref<8x1xf32, #tpu.memory_space<vmem>>, vector<8x1xf32>
      tpu.vector_store %arg4[%c0_10, %c0_11], %20 {strides = array<i32>} : memref<8x1xf32, #tpu.memory_space<vmem>>, vector<8x1xf32>,
    } else {
    }
    %c0 = arith.constant 0 : index
    %c0_1 = arith.constant 0 : index
    %3 = vector.load %arg2[%c0, %c0_1] : memref<8x32xf32, #tpu.memory_space<vmem>>, vector<8x32xf32>
    %c0_2 = arith.constant 0 : index
    %c0_3 = arith.constant 0 : index
    %4 = vector.load %arg3[%c0_2, %c0_3] : memref<8x32xf32, #tpu.memory_space<vmem>>, vector<8x32xf32>
    %5 = arith.subf %3, %4 : vector<8x32xf32>
    %6 = tpu.iota {dimensions = array<i32: 0>} : vector<8x32xi32>
    %c8_i32 = arith.constant 8 : i32
    %7 = arith.muli %arg0, %c8_i32 : i32
    %8 = vector.broadcast %7 : i32 to vector<8x32xi32>
    %9 = arith.addi %6, %8 : vector<8x32xi32>
    %c12_i32 = arith.constant 12 : i32
    %10 = vector.broadcast %c12_i32 : i32 to vector<8x32xi32>
    %11 = arith.cmpi slt, %9, %10 : vector<8x32xi32>
    %cst = arith.constant 0.000000e+00 : f32
    %12 = vector.broadcast %cst : f32 to vector<8x32xf32>
    %13 = arith.select %11, %5, %12 : vector<8x32xi1>, vector<8x32xf32>
    %c0_4 = arith.constant 0 : index
    %c0_5 = arith.constant 0 : index
    %14 = vector.load %arg4[%c0_4, %c0_5] : memref<8x1xf32, #tpu.memory_space<vmem>>, vector<8x1xf32>
    %15 = arith.mulf %13, %13 : vector<8x32xf32>
    %cst_6 = arith.constant dense<0.000000e+00> : vector<8xf32>
    %16 = vector.multi_reduction <add>, %15, %cst_6 [1] : vector<8x32xf32> to vector<8xf32>
    %17 = vector.shape_cast %16 : vector<8xf32> to vector<8x1xf32>
    %18 = arith.addf %14, %17 : vector<8x1xf32>
    %c0_7 = arith.constant 0 : index
    %c0_8 = arith.constant 0 : index
    %19 = vector.load %arg4[%c0_7, %c0_8] : memref<8x1xf32, #tpu.memory_space<vmem>>, vector<8x1xf32>
    tpu.vector_store %arg4[%c0_7, %c0_8], %18 {strides = array<i32>} : memref<8x1xf32, #tpu.memory_space<vmem>>, vector<8x1xf32>,
    return
  }
  func.func @transform_0(%arg0: i32, %arg1: i32) -> (i32, i32) {
    %c0_i32 = arith.constant 0 : i32
    return %arg0, %arg1 : i32, i32
  }
  func.func @transform_1(%arg0: i32, %arg1: i32) -> (i32, i32) {
    %c0_i32 = arith.constant 0 : i32
    return %arg0, %arg1 : i32, i32
  }
  func.func @transform_2(%arg0: i32, %arg1: i32) -> (i32, i32) {
    %c0_i32 = arith.constant 0 : i32
    %c0_i32_0 = arith.constant 0 : i32
    return %arg0, %c0_i32 : i32, i32
  }
}

</mosaic_0001>

<bundles_post_ra>
// kernel: tpu_custom_call.1
= control target key start
LH: loop header
LB: loop body
LE: loop exit
PB: predicated region body
PF: predicated region fallthrough
CT: control target
= control target key end

     0   :  { %7 = vsyncpa [#allocation3], 0  ;;  %s722_s0 = inlined_call_operand.hbm [shape: f32[12,32], index: 0, kind: input, shape index: {}]   ;;  %s723_s1 = inlined_call_operand.hbm [shape: f32[12,32], index: 1, kind: input, shape index: {}]   ;;  %s724_s2 = inlined_call_operand.vmem [shape: f32[12,1], index: 2, kind: output, shape index: {}]  }
   0x1   :  { %9 = vsyncpa [#allocation3 + $0x1], 0 }
   0x2   :  { %10 = vsyncpa [#allocation5], 0 }
   0x3   :  { %12 = vsyncpa [#allocation5 + $0x1], 0  ;;  %s547_s9 = smov 0   ;;  %s549_s10 = smov 0  }
   0x4   :  { %s551_s11 = smov 0   ;;  %s553_s12 = smov 0  }
   0x5   :  { %s555_s13 = smov 0   ;;  %s557_s14 = smov 0  }
   0x6 LB: > { %s337_s15 = sadd.s32 4294967295, %s527_s14   ;;  %s30_s16 = sadd.s32 1, %s523_s13  ;;  %s527_s14 = sphi %s557_s14, %s18_s14   ;;  %s523_s13 = sphi %s555_s13, %s738_s13   ;;  %s519_s12 = sphi %s553_s12, %s737_s12   ;;  %s515_s11 = sphi %s551_s11, %s736_s11   ;;  %s511_s10 = sphi %s549_s10, %s735_s10   ;;  %s507_s9 = sphi %s547_s9, %s734_s9  }
   0x7   : > { %p32_p0 = scmp.ge.s32.totalorder %s30_s16, 2  ;;  %s39_s17 = sadd.s32 1, %s515_s11 }
   0x8   : > { %p46_p1 = scmp.ne.s32.totalorder %s515_s11, %s511_s10  ;;  %p47_p2 = scmp.eq.s32.totalorder %s527_s14, 0 }
   0x9   : > { %s740_s16 = smov (%p32_p0, %s30_s16), 0  ;;  %p52_p4 = scmp.ne.s32.totalorder %s511_s10, %s507_s9 }
   0xa   : > { %p583_p3 = por %p47_p2, %p46_p1  ;;  %s34_s19 = ssub.s32 %s523_s13, %s740_s16 }
   0xb   : > { %p53_p5 = scmp.eq.s32.totalorder %s337_s15, 0  ;;  %p37_p6 = scmp.eq.s32.totalorder %s34_s19, 0 }
   0xc   : > { %p363_p8 = scmp.lt.s32.totalorder %s527_s14, 2  ;;  %s599_s22 = sand.u32 1, %s515_s11  }
   0xd   : > { %p590_p7 = por %p53_p5, %p52_p4  ;;  %s342_s23 = sshll.u32 %s523_s13, 7 }
   0xe   : > { %s596_s21 = scalar_select %p37_p6, %s515_s11, %s39_s17  }
   0xf   : > { %s727_s20 = scalar_select %p590_p7, 1, 0 }
  0x10   : > { %s341_s24 = sshll.u32 %s599_s22, 3  ;;  %s608_s27 = scalar_lea.hbm %s722_s0, %s342_s23 }
  0x11   : > { %s134_s28 = scalar_lea.vmem [#allocation2], %s341_s24  ;;  %p614_p9 = pnand %p363_p8, %p583_p3 }
  0x12   : > { %s142_s29 = sshll.u32 %s134_s28, 4  ;;  %s131_s3 = scalar_lea.sflag [#allocation3], %s599_s22  ;;  %s618_s29 = int_to_ptr.vmem [resolvable:$true] %s142_s29 }
  0x13   : > { %s413_s4 = scalar_lea.hbm %s608_s27, 128  ;;  %p415_p13 = pneg %p614_p9 }
  0x14   : > { %p414_p12 = scmp.ne.s32.totalorder %s608_s27, %s413_s4  ;;  %s418_s7 = scalar_lea.hbm %s722_s0, 256 }
  0x15   : > { %p419_p2 = scmp.lt.u32.totalorder %s608_s27, %s722_s0  ;;  %p420_p3 = scmp.lt.u32.totalorder %s418_s7, %s413_s4 }
  0x16   : > { %p416_p0 = pnand %p415_p13, %p414_p12  ;;  %p422_p5 = scmp.lt.u32.totalorder %s413_s4, %s608_s27 }
  0x17   : > { %p421_p4 = por %p420_p3, %p419_p2 }
  0x18   : > { %p417_p1 = pneg %p416_p0 }
  0x19   : > { %p423_p6 = por %p422_p5, %p421_p4 }
  0x1b   : > { %p424_p8 = pnand %p423_p6, %p417_p1 }
  0x1d   : > { %427 = shalt.err (!%p424_p8)
}
  0x1e   : > { %s428_s15 = scalar_lea.vmem %s618_s29, 128  ;;  %s529_s17 = smov [#allocation2]  }
  0x1f   : > { %p429_p12 = scmp.ne.s32.totalorder %s618_s29, %s428_s15  ;;  %s433_s18 = sshll.u32 %s529_s17, 4  ;;  %s434_s18 = int_to_ptr.vmem [resolvable:$false] %s433_s18 }
  0x20   : > { %s435_s19 = scalar_lea.vmem %s434_s18, 256  ;;  %p436_p11 = scmp.lt.s32.totalorder %s618_s29, %s434_s18 }
  0x21   : > { %p431_p0 = pnand %p429_p12, %p415_p13  ;;  %p437_p2 = scmp.lt.s32.totalorder %s435_s19, %s428_s15 }
  0x23   : > { %p432_p10 = pneg %p431_p0  ;;  %p438_p3 = por %p437_p2, %p436_p11 }
  0x25   : > { %p439_p4 = pnand %p438_p3, %p432_p10 }
  0x27   : > { %442 = shalt.err (!%p439_p4)
}
  0x28   : > { %359 = dma.hbm_to_vmem [thread:$0]  (!%p614_p9), %s608_s27, 128, %s618_s29, %s131_s3  }
  0x29   : > { %p729_p1 = scmp.lt.s32.totalorder %s527_s14, 3  ;;  %p730_p5 = scmp.ge.s32.totalorder %s527_s14, 1 }
  0x2a   : > { %s661_s4 = scalar_lea.hbm %s723_s1, %s342_s23  ;;  %s153_s5 = scalar_lea.vmem [#allocation4], %s341_s24 }
  0x2b   : > { %p652_p6 = pnand %p730_p5, %p729_p1  ;;  %s161_s6 = sshll.u32 %s153_s5, 4  ;;  %s162_s6 = int_to_ptr.vmem [resolvable:$true] %s161_s6 }
  0x2c   : > { %s150_s27 = scalar_lea.sflag [#allocation5], %s599_s22  ;;  %s443_s29 = scalar_lea.hbm %s661_s4, 128 }
  0x2d   : > { %s731_s25 = scalar_select %p652_p6, 1, 0 }
  0x2e   : > { %p444_p10 = scmp.ne.s32.totalorder %s661_s4, %s443_s29  ;;  %s448_s23 = scalar_lea.hbm %s723_s1, 256 }
  0x2f   : > { %p449_p12 = scmp.lt.u32.totalorder %s661_s4, %s723_s1  ;;  %p450_p0 = scmp.lt.u32.totalorder %s448_s23, %s443_s29 }
  0x30   : > { %p446_p11 = pnand %p444_p10, %p415_p13  ;;  %p452_p3 = scmp.lt.u32.totalorder %s443_s29, %s661_s4 }
  0x31   : > { %p451_p2 = por %p450_p0, %p449_p12 }
  0x32   : > { %p447_p8 = pneg %p446_p11 }
  0x33   : > { %p453_p4 = por %p452_p3, %p451_p2 }
  0x35   : > { %p454_p1 = pnand %p453_p4, %p447_p8 }
  0x37   : > { %457 = shalt.err (!%p454_p1)
}
  0x38   : > { %s458_s22 = scalar_lea.vmem %s162_s6, 128  ;;  %s530_s24 = smov [#allocation4]  }
  0x39   : > { %p459_p5 = scmp.ne.s32.totalorder %s162_s6, %s458_s22  ;;  %s463_s15 = sshll.u32 %s530_s24, 4  ;;  %s464_s15 = int_to_ptr.vmem [resolvable:$false] %s463_s15 }
  0x3a   : > { %s465_s17 = scalar_lea.vmem %s464_s15, 256  ;;  %p466_p7 = scmp.lt.s32.totalorder %s162_s6, %s464_s15 }
  0x3b   : > { %p461_p10 = pnand %p459_p5, %p415_p13  ;;  %p467_p6 = scmp.lt.s32.totalorder %s465_s17, %s458_s22 }
  0x3d   : > { %p462_p11 = pneg %p461_p10  ;;  %p468_p0 = por %p467_p6, %p466_p7 }
  0x3f   : > { %p469_p12 = pnand %p468_p0, %p462_p11 }
  0x41   : > { %472 = shalt.err (!%p469_p12)
}
  0x42   : > { %362 = dma.hbm_to_vmem [thread:$0]  (!%p614_p9), %s661_s4, 128, %s162_s6, %s150_s27  }
  0x43   : > { %p732_p8 = scmp.ne.s32.totalorder %s731_s25, 0 }
  0x44   : > { %s172_s18 = sand.u32 (!%p732_p8), 1, %s511_s10   ;;  %p733_p13 = scmp.ne.s32.totalorder (!%p732_p8), %s727_s20, 0 }
  0x45   : > { %170 = sbr.rel (%p732_p8) target bundleno = 235 (0xeb), region = 28  ;;  %s346_s19 = sshll.u32 (!%p732_p8), %s172_s18, 3 }
  0x46   : > { %s173_s26 = scalar_lea.sflag (!%p732_p8), [#allocation3], %s172_s18  ;;  %s176_s28 = scalar_lea.vmem (!%p732_p8), [#allocation2], %s346_s19 }
  0x4c   : > { %498 = dma.done.wait (%p733_p13), %s173_s26, 128  }
  0x4d   : > { %500 = vsyncadd (%p733_p13), %s173_s26, 4294967168  ;;  %s182_s5 = scalar_lea.sflag [#allocation5], %s172_s18  ;;  %s185_s29 = scalar_lea.vmem [#allocation4], %s346_s19 }
  0x4e   : > { %502 = dma.done.wait (%p733_p13), %s182_s5, 128  }
  0x4f   : > { %504 = vsyncadd (%p733_p13), %s182_s5, 4294967168  ;;  %v223_v0 = vlaneseq  ;;  %s349_s30 = sshll.u32 %s519_s12, 3  ;;  %p210_p7 = scmp.lt.s32.totalorder %s519_s12, 1  ;;  %vm218_vm0 = vcmask 7168   ;;  %v531_v4 = vmov 0.0   ;;  %v220_v5 = vld [vmem:[%s176_s28] sm:$0xff] }
  0x50   : > { %v226_v1 = vstv %s349_s30  ;;  %v221_v6 = vld [vmem:[%s185_s29] sm:$0xff]  ;;  %vm232_vm2 = vcmask 261120  }
  0x51   : > { %v224_v2 = vshrl.u32 %v223_v0, 7  ;;  %s742_s12 = smov (!%p210_p7, %s519_s12), 1  ;;  %v222_v7 = vsub.f32 %v220_v5, %v221_v6 }
  0x52   : > { %s348_s25 = sshll.u32 %s742_s12, 3 }
  0x53   : > { %v227_v3 = vadd.s32 %v226_v1, %v224_v2  ;;  %s213_s27 = scalar_lea.vmem %s724_s2, %s348_s25 }
  0x54   : > { %219 = vst.msk [vmem:[%s213_s27] sm:$0xff] %vm218_vm0, %v531_v4 }
  0x55   : > { %vm228_vm1 = vcmp.lt.s32.totalorder %v227_v3, 12 }
  0x56   : > { %v229_v8 = vsel %vm228_vm1, %v222_v7, 0.0 }
  0x57   : > { %v231_v9 = vmul.f32 %v229_v8, %v229_v8 }
  0x59   : > { %v233_v10 = vsel %vm232_vm2, %v231_v9, 0.0 }
  0x5a   : > { %234 = vadd.xlane.f32.xlu0 %v233_v10 }
  0x5b   : > { %v230_v11 = vld [vmem:[%s213_s27] sm:$0xff] }
  0xe7   : > { %v235_v12 = vpop.xlane.xlu0 %234 }
  0xe8   : > { %v236_v13 = vadd.f32 %v235_v12, %v230_v11 }
  0xea   : > { %238 = vst.msk [vmem:[%s213_s27] sm:$0xff] %vm218_vm0, %v236_v13 }
  0xeb PF: > { %s18_s14 = sadd.s32 1, %s527_s14   ;;  %s734_s9 = smov %s511_s10 }
  0xec   : > { %p15_p9 = scmp.ge.s32.totalorder %s18_s14, 4   ;;  %s735_s10 = smov %s515_s11 }
  0xed   : > { %s736_s11 = smov %s596_s21  ;;  %s737_s12 = smov %s523_s13 }
  0xee   : > { %s738_s13 = smov %s740_s16  ;;  %17 = sbr.rel (!%p15_p9) target bundleno = 6 (0x6), region = 85 }
  0xf5   :  { %258 = vsyncpa [#allocation3], 1 }
  0xf6   :  { %260 = vsyncpa [#allocation3 + $0x1], 1 }
  0xf7   :  { %261 = vsyncpa [#allocation5], 1 }
  0xf8   :  { %263 = vsyncpa [#allocation5 + $0x1], 1 }

</bundles_post_ra>
